<compile_context>
chip_gen: v6e
topology: v6e:2x2x1
jax: 0.10.0
libtpu: 0.0.40
codegen_flags: <defaults>
</compile_context>

<pallas_src>
import random

import jax
import jax.numpy as jnp
import numpy as np
from jax.experimental import pallas as pl
from jax.experimental.pallas import tpu as pltpu

# Per-step VMEM residency budget for tile selection (v7x has 64 MiB physical;
# leave headroom).  vmem_limit_bytes is set slightly above the budget.
_VMEM_TILE_BUDGET = 40 * 1024 * 1024
_VMEM_LIMIT_BYTES = 48 * 1024 * 1024


def _round_up(x, m):
    return ((x + m - 1) // m) * m


def _cdiv(a, b):
    return -(-a // b)


def _encoder_kernel(x_ref, w_ref, b_ref, out_ref, acc_ref):
    """One (TB, TK) @ (TK, E) MXU step of emb = x @ W + b, accumulated in f32."""
    k = pl.program_id(1)

    @pl.when(k == 0)
    def _():
        acc_ref[...] = jnp.zeros_like(acc_ref)

    acc_ref[...] += jnp.dot(x_ref[...], w_ref[...],
                            preferred_element_type=jnp.float32)

    @pl.when(k == pl.num_programs(1) - 1)
    def _():
        # bf16 store (halves HBM writeback); accumulation stayed f32.
        out_ref[...] = (acc_ref[...] + b_ref[...]).astype(out_ref.dtype)


def _pick_tiles(R, D_pad, E_pad):
    """Pick (TB, TK) under the VMEM residency budget, with balanced row tiles.

    Residency per grid step (double-buffered bf16 x and bf16 out, bf16 W,
    f32 accumulator):
        2*TB*TK*2 + 2*TK*E_pad*2 + TB*E_pad*4 + 2*TB*E_pad*2 + bias
    """
    tk_cands = [t for t in (2048, 1024, 512, 256, 128) if D_pad % t == 0]
    if not tk_cands:
        tk_cands = [D_pad]
    for TK in tk_cands:
        fixed = 2 * TK * E_pad * 2 + 2 * E_pad * 4          # W tiles + bias
        per_row = 2 * TK * 2 + E_pad * 4 + 2 * E_pad * 2    # x + acc + out
        tb_max = (_VMEM_TILE_BUDGET - fixed) // per_row
        tb_max = min(int(tb_max), 1024)
        if tb_max >= 8:
            tb_cap = (tb_max // 8) * 8
            n_tiles = max(1, _cdiv(R, tb_cap))
            # v7x megacore: make sure the "parallel" row axis has >= 2 tiles
            # when there are enough rows; cost on v5e/v6e is one extra grid
            # step (~0.35 us), negligible.
            if n_tiles == 1 and R >= 16:
                n_tiles = 2
            TB = _round_up(_cdiv(R, n_tiles), 8)
            return TB, TK
    return 8, 128


def linear_encode(x, w, b):
    """emb = x @ w + b via a tiled, pipelined Pallas matmul.

    x: (R, D), w: (D, E), b: (1, E) or (E,).  Returns (R, E) bfloat16.
    Operands are cast to bf16; accumulation is f32; the bf16 cast happens at
    the last-k store inside the kernel.
    """
    R, D = x.shape
    E = w.shape[1]
    assert w.shape[0] == D

    D_pad = _round_up(D, 128)
    E_pad = _round_up(E, 128)
    TB, TK = _pick_tiles(R, D_pad, E_pad)
    R_pad = _round_up(R, TB)

    # Cast once; only run a padding pass when the shapes actually need it
    # (zero padding is exact for a linear layer -- padded rows just get `b`).
    x_b = x.astype(jnp.bfloat16)
    if (R_pad, D_pad) != (R, D):
        x_b = jnp.zeros((R_pad, D_pad), jnp.bfloat16).at[:R, :D].set(x_b)
    w_b = w.astype(jnp.bfloat16)
    if (D_pad, E_pad) != (D, E):
        w_b = jnp.zeros((D_pad, E_pad), jnp.bfloat16).at[:D, :E].set(w_b)
    b_f = b.astype(jnp.float32).reshape(1, E)
    if E_pad != E:
        b_f = jnp.zeros((1, E_pad), jnp.float32).at[:, :E].set(b_f)

    grid = (R_pad // TB, D_pad // TK)

    flops = 2 * R_pad * D_pad * E_pad
    bytes_accessed = (x_b.size * 2                  # bf16 activations
                      + w_b.size * 2 * grid[0]      # bf16 weight per row tile
                      + b_f.size * 4
                      + R_pad * E_pad * 2)          # bf16 embeddings out

    emb = pl.pallas_call(
        _encoder_kernel,
        out_shape=jax.ShapeDtypeStruct((R_pad, E_pad), jnp.bfloat16),
        grid_spec=pltpu.PrefetchScalarGridSpec(
            num_scalar_prefetch=0,
            grid=grid,
            in_specs=[
                pl.BlockSpec((TB, TK), lambda i, k: (i, k)),      # x tile
                pl.BlockSpec((TK, E_pad), lambda i, k: (k, 0)),   # W tile
                pl.BlockSpec((1, E_pad), lambda i, k: (0, 0)),    # bias
            ],
            out_specs=pl.BlockSpec((TB, E_pad), lambda i, k: (i, 0)),
            scratch_shapes=[pltpu.VMEM((TB, E_pad), jnp.float32)],
        ),
        compiler_params=pltpu.CompilerParams(
            dimension_semantics=("parallel", "arbitrary"),
            vmem_limit_bytes=_VMEM_LIMIT_BYTES,
        ),
        cost_estimate=pl.CostEstimate(
            flops=flops, transcendentals=0, bytes_accessed=bytes_accessed),
    )(x_b, w_b, b_f)

    if (R_pad, E_pad) != (R, E):
        emb = emb[:R, :E]
    return emb


def select_triplets_random(batch_labels, seed=0):
    """Deterministic equivalent of OnlineSiameseModel.batch_random (no logging)."""
    rng = random.Random(seed)
    labels = np.asarray(batch_labels).tolist()
    label_dict = {}
    for i, v in enumerate(labels):
        label_dict.setdefault(v, []).append(i)
    if len(label_dict) < 2:
        raise ValueError("batch_random needs at least two distinct labels "
                         "to mine negatives (same limitation as the PyTorch "
                         "module, surfaced explicitly here).")
    triplets = []
    for idx_a, lab_a in enumerate(labels):
        idx_p = rng.choice(label_dict[lab_a])
        neg_list = [i for lab, lst in label_dict.items() if lab != lab_a
                    for i in lst]
        idx_n = neg_list[rng.choice(range(len(neg_list)))]
        triplets.append((idx_a, idx_p, idx_n))
    return triplets


def online_siamese_forward(batch_imgs, batch_labels, w, b, alpha, seed=0):
    """Forward of OnlineSiameseModel (method='random' mining).

    Returns (loss_triplet_mean, triplets).
    """
    triplets = select_triplets_random(batch_labels, seed=seed)
    a_idx = jnp.asarray([t[0] for t in triplets], dtype=jnp.int32)
    p_idx = jnp.asarray([t[1] for t in triplets], dtype=jnp.int32)
    n_idx = jnp.asarray([t[2] for t in triplets], dtype=jnp.int32)

    B = batch_imgs.shape[0]
    flat = jnp.reshape(batch_imgs, (B, -1))

    # Encode only the B unique images once; all 3N triplet rows are duplicates
    # of these B rows, so the gather happens on the tiny (B, E) embedding
    # matrix instead of the (3N, D) activations (per perf review: ~3x fewer
    # matmul FLOPs / activation HBM reads, W streams through the MXU once).
    emb = linear_encode(flat, w, b).astype(jnp.float32)        # (B, E) f32

    emb_a = emb[a_idx]
    emb_p = emb[p_idx]
    emb_n = emb[n_idx]

    # Tiny O(N*E) epilogue left to XLA, computed in f32.
    diff_p = emb_a - emb_p
    diff_n = emb_a - emb_n
    dist_pos = jnp.sum(diff_p * diff_p, axis=-1)
    dist_neg = jnp.sum(diff_n * diff_n, axis=-1)
    loss_triplet = jax.nn.relu(dist_pos - dist_neg + alpha)
    return jnp.mean(loss_triplet), triplets


def _reference_loss(batch_imgs, triplets, w, b, alpha):
    """Pure-JAX reference with identical math (bf16 operands/output, f32 acc)."""
    a_idx = np.array([t[0] for t in triplets])
    p_idx = np.array([t[1] for t in triplets])
    n_idx = np.array([t[2] for t in triplets])
    B = batch_imgs.shape[0]
    flat = jnp.reshape(batch_imgs, (B, -1))

    emb = (jnp.dot(flat.astype(jnp.bfloat16), w.astype(jnp.bfloat16),
                   preferred_element_type=jnp.float32)
           + b.astype(jnp.float32).reshape(1, -1)).astype(jnp.bfloat16)
    emb = emb.astype(jnp.float32)

    ea, ep, en = emb[a_idx], emb[p_idx], emb[n_idx]
    dp = jnp.sum((ea - ep) ** 2, axis=-1)
    dn = jnp.sum((ea - en) ** 2, axis=-1)
    return jnp.mean(jax.nn.relu(dp - dn + alpha))


if __name__ == "__main__":
    # Small, TPU-friendly shapes: B=8 images, C=4, H=W=16 -> D=1024; E=128.
    B, C, H, W = 8, 4, 16, 16
    D = C * H * W
    E = 128
    alpha = 1.0

    key = jax.random.PRNGKey(0)
    k_img, k_w, k_b = jax.random.split(key, 3)

    batch_imgs = jax.random.normal(k_img, (B, C, H, W), dtype=jnp.float32)
    batch_labels = np.array([0, 0, 1, 1, 2, 2, 3, 3], dtype=np.int32)

    # Deterministic synthetic encoder parameters (Linear D -> E).
    w = jax.random.normal(k_w, (D, E), dtype=jnp.float32) * (1.0 / np.sqrt(D))
    b = jax.random.normal(k_b, (1, E), dtype=jnp.float32) * 0.01

    loss, triplets = online_siamese_forward(
        batch_imgs, batch_labels, w, b, alpha, seed=0)
    loss = jax.block_until_ready(loss)

    loss_ref = _reference_loss(batch_imgs, triplets, w, b, alpha)
    np.testing.assert_allclose(np.asarray(loss), np.asarray(loss_ref),
                               rtol=1e-2, atol=1e-2)

    print("KERNEL_OK")
</pallas_src>

<mosaic_0001>
module attributes {stable_mosaic.version = 11 : i64} {
  func.func @_encoder_kernel(%arg0: i32, %arg1: i32, %arg2: memref<8x1024xbf16, #tpu.memory_space<vmem>>, %arg3: memref<1024x128xbf16, #tpu.memory_space<vmem>>, %arg4: memref<1x128xf32, #tpu.memory_space<vmem>>, %arg5: memref<8x128xbf16, #tpu.memory_space<vmem>>, %arg6: memref<8x128xf32, #tpu.memory_space<vmem>>) attributes {dimension_semantics = [#tpu.dimension_semantics<parallel>, #tpu.dimension_semantics<arbitrary>], iteration_bounds = array<i64: 1, 1>, scalar_prefetch = 0 : i64, scratch_operands = 1 : i64, tpu.core_type = #tpu.core_type<tc>, window_params = [{transform_indices = @transform_0, window_bounds = array<i64: 8, 1024>}, {transform_indices = @transform_1, window_bounds = array<i64: 1024, 128>}, {pipeline_mode = #tpu.pipeline_mode<synchronous>, transform_indices = @transform_2, window_bounds = array<i64: 1, 128>}, {transform_indices = @transform_3, window_bounds = array<i64: 8, 128>}]} {
    %c0_i32 = arith.constant 0 : i32
    %0 = arith.cmpi eq, %arg1, %c0_i32 : i32
    %1 = arith.extui %0 : i1 to i32
    %c0_i32_0 = arith.constant 0 : i32
    %2 = arith.cmpi ne, %1, %c0_i32_0 : i32
    scf.if %2 {
      %cst_10 = arith.constant 0.000000e+00 : f32
      %12 = vector.broadcast %cst_10 : f32 to vector<8x128xf32>
      %c0_11 = arith.constant 0 : index
      %c0_12 = arith.constant 0 : index
      %13 = vector.load %arg6[%c0_11, %c0_12] : memref<8x128xf32, #tpu.memory_space<vmem>>, vector<8x128xf32>
      tpu.vector_store %arg6[%c0_11, %c0_12], %12 {strides = array<i32>} : memref<8x128xf32, #tpu.memory_space<vmem>>, vector<8x128xf32>,
    } else {
    }
    %c0 = arith.constant 0 : index
    %c0_1 = arith.constant 0 : index
    %3 = vector.load %arg6[%c0, %c0_1] : memref<8x128xf32, #tpu.memory_space<vmem>>, vector<8x128xf32>
    %c0_2 = arith.constant 0 : index
    %c0_3 = arith.constant 0 : index
    %4 = vector.load %arg2[%c0_2, %c0_3] : memref<8x1024xbf16, #tpu.memory_space<vmem>>, vector<8x1024xbf16>
    %c0_4 = arith.constant 0 : index
    %c0_5 = arith.constant 0 : index
    %5 = vector.load %arg3[%c0_4, %c0_5] : memref<1024x128xbf16, #tpu.memory_space<vmem>>, vector<1024x128xbf16>
    %cst = arith.constant dense<0.000000e+00> : vector<8x128xf32>
    %6 = tpu.matmul %4, %5, %cst {dimension_numbers = #tpu.dot_dimension_numbers<[1], [0], [0], [1], [0, 0, 1, 1], [], []>} : vector<8x1024xbf16>, vector<1024x128xbf16>, vector<8x128xf32> -> vector<8x128xf32>
    %7 = arith.addf %3, %6 : vector<8x128xf32>
    %c0_6 = arith.constant 0 : index
    %c0_7 = arith.constant 0 : index
    %8 = vector.load %arg6[%c0_6, %c0_7] : memref<8x128xf32, #tpu.memory_space<vmem>>, vector<8x128xf32>
    tpu.vector_store %arg6[%c0_6, %c0_7], %7 {strides = array<i32>} : memref<8x128xf32, #tpu.memory_space<vmem>>, vector<8x128xf32>,
    %c0_i32_8 = arith.constant 0 : i32
    %9 = arith.cmpi eq, %arg1, %c0_i32_8 : i32
    %10 = arith.extui %9 : i1 to i32
    %c0_i32_9 = arith.constant 0 : i32
    %11 = arith.cmpi ne, %10, %c0_i32_9 : i32
    scf.if %11 {
      %c0_10 = arith.constant 0 : index
      %c0_11 = arith.constant 0 : index
      %12 = vector.load %arg6[%c0_10, %c0_11] : memref<8x128xf32, #tpu.memory_space<vmem>>, vector<8x128xf32>
      %c0_12 = arith.constant 0 : index
      %c0_13 = arith.constant 0 : index
      %13 = vector.load %arg4[%c0_12, %c0_13] : memref<1x128xf32, #tpu.memory_space<vmem>>, vector<1x128xf32>
      %14 = vector.broadcast %13 : vector<1x128xf32> to vector<8x128xf32>
      %15 = arith.addf %12, %14 : vector<8x128xf32>
      %16 = arith.truncf %15 : vector<8x128xf32> to vector<8x128xbf16>
      %c0_14 = arith.constant 0 : index
      %c0_15 = arith.constant 0 : index
      %17 = vector.load %arg5[%c0_14, %c0_15] : memref<8x128xbf16, #tpu.memory_space<vmem>>, vector<8x128xbf16>
      tpu.vector_store %arg5[%c0_14, %c0_15], %16 {strides = array<i32>} : memref<8x128xbf16, #tpu.memory_space<vmem>>, vector<8x128xbf16>,
    } else {
    }
    return
  }
  func.func @transform_0(%arg0: i32, %arg1: i32) -> (i32, i32) {
    %c0_i32 = arith.constant 0 : i32
    return %arg0, %arg1 : i32, i32
  }
  func.func @transform_1(%arg0: i32, %arg1: i32) -> (i32, i32) {
    %c0_i32 = arith.constant 0 : i32
    %c0_i32_0 = arith.constant 0 : i32
    return %arg1, %c0_i32 : i32, i32
  }
  func.func @transform_2(%arg0: i32, %arg1: i32) -> (i32, i32) {
    %c0_i32 = arith.constant 0 : i32
    %c0_i32_0 = arith.constant 0 : i32
    %c0_i32_1 = arith.constant 0 : i32
    return %c0_i32, %c0_i32_0 : i32, i32
  }
  func.func @transform_3(%arg0: i32, %arg1: i32) -> (i32, i32) {
    %c0_i32 = arith.constant 0 : i32
    %c0_i32_0 = arith.constant 0 : i32
    return %arg0, %c0_i32 : i32, i32
  }
}

</mosaic_0001>

<bundles_post_ra>
// kernel: tpu_custom_call.1
= control target key start
LH: loop header
LB: loop body
LE: loop exit
PB: predicated region body
PF: predicated region fallthrough
CT: control target
= control target key end

     0   :  { %8 = vsyncpa [#allocation4], 0  ;;  %s1125_s0 = inlined_call_operand.hbm [shape: bf16[8,1024], index: 0, kind: input, shape index: {}]   ;;  %s1126_s1 = inlined_call_operand.hbm [shape: bf16[1024,128], index: 1, kind: input, shape index: {}]   ;;  %s1127_s2 = inlined_call_operand.vmem [shape: f32[1,128], index: 2, kind: input, shape index: {}]   ;;  %s1128_s3 = inlined_call_operand.hbm [shape: bf16[8,128], index: 3, kind: output, shape index: {}]  }
   0x1   :  { %9 = vsyncpa [#allocation7], 0 }
   0x2   :  { %10 = vsyncpa [#allocation5], 0  ;;  %s1088_s12 = smov [#allocation3]   ;;  %s1089_s14 = smov [#allocation6]  }
   0x3   :  { %s17_s13 = sshll.u32 %s1088_s12, 4  ;;  %s26_s15 = sshll.u32 %s1089_s14, 4  ;;  %s18_s13 = int_to_ptr.vmem [resolvable:$true] %s17_s13  ;;  %s27_s15 = int_to_ptr.vmem [resolvable:$true] %s26_s15 }
   0x4   :  { %s1030_s16 = scalar_lea.vmem %s18_s13, 512  ;;  %p1035_p1 = scmp.lt.s32.totalorder %s18_s13, %s18_s13 }
   0x5   :  { %p1031_p0 = scmp.ne.s32.totalorder %s18_s13, %s1030_s16  ;;  %p1036_p2 = scmp.lt.s32.totalorder %s1030_s16, %s1030_s16 }
   0x7   :  { %p1037_p3 = por %p1036_p2, %p1035_p1 }
   0x9   :  { %p1038_p4 = pnand %p1037_p3, %p1031_p0 }
   0xb   :  { %1041 = shalt.err (!%p1038_p4)
}
   0xc   :  { %20 = dma.hbm_to_vmem [thread:$0]  %s1125_s0, 512, %s18_s13, [#allocation4]  }
   0xd   :  { %s1050_s19 = scalar_lea.vmem %s27_s15, 8192  ;;  %p1055_p6 = scmp.lt.s32.totalorder %s27_s15, %s27_s15 }
   0xe   :  { %p1051_p5 = scmp.ne.s32.totalorder %s27_s15, %s1050_s19  ;;  %p1056_p7 = scmp.lt.s32.totalorder %s1050_s19, %s1050_s19 }
  0x10   :  { %p1057_p8 = por %p1056_p7, %p1055_p6 }
  0x12   :  { %p1058_p9 = pnand %p1057_p8, %p1051_p5 }
  0x14   :  { %1061 = shalt.err (!%p1058_p9)
}
  0x15   :  { %s1090_s20 = smov 64   ;;  %s1091_s21 = smov 4  }
  0x16   :  { %32 = dma.hbm_to_vmem [thread:$0]  %s1126_s1, 8192, %s27_s15, [#allocation7], %s1090_s20, %s1090_s20, %s1091_s21  }
  0x17   :  { %1082 = dma.done.wait [#allocation4], 512  }
  0x18   :  { %1083 = vsyncadd [#allocation4], 4294966784 }
  0x19   :  { %1084 = dma.done.wait [#allocation7], 8192  }
  0x1a   :  { %1085 = vsyncadd [#allocation7], 4294959104  ;;  %v950_v0 = vld [vmem:[#allocation6 + $0x78] sm:$0xff]   ;;  %v954_v4 = vld [vmem:[#allocation6 + $0x70] sm:$0xff]   ;;  %s1092_s24 = smov [#allocation8]  }
  0x1b   :  { %v951_v1 = vld [vmem:[#allocation6 + $0xf8] sm:$0xff]   ;;  %857 = vmatprep.subr.bf16.mxu0 %v950_v0  ;;  %v955_v5 = vld [vmem:[#allocation6 + $0xf0] sm:$0xff]   ;;  %v958_v8 = vld [vmem:[#allocation6 + $0x68] sm:$0xff]   ;;  %s774_s25 = sshll.u32 %s1092_s24, 4  ;;  %s775_s25 = int_to_ptr.vmem [resolvable:$true] %s774_s25 }
  0x1c   :  { %v952_v2 = vld [vmem:[#allocation6 + $0x38] sm:$0xff]   ;;  %879 = vmatprep.subr.bf16.mxu1 %v951_v1  ;;  %v956_v6 = vld [vmem:[#allocation6 + $0x30] sm:$0xff]   ;;  %v959_v9 = vld [vmem:[#allocation6 + $0xe8] sm:$0xff]   ;;  %s1062_s26 = scalar_lea.vmem %s775_s25, 64  ;;  %p1067_p11 = scmp.lt.s32.totalorder %s775_s25, %s775_s25 }
  0x1d   :  { %v953_v3 = vld [vmem:[#allocation6 + $0xb8] sm:$0xff]   ;;  %858 = vmatpush3.bf16.msra.mxu0 %v952_v2  ;;  %v957_v7 = vld [vmem:[#allocation6 + $0xb0] sm:$0xff]   ;;  %v960_v10 = vld [vmem:[#allocation6 + $0x28] sm:$0xff]   ;;  %p1063_p10 = scmp.ne.s32.totalorder %s775_s25, %s1062_s26  ;;  %p1068_p12 = scmp.lt.s32.totalorder %s1062_s26, %s1062_s26 }
  0x1e   :  { %880 = vmatpush3.bf16.msra.mxu1 %v953_v3  ;;  %859 = vmatprep.subr.bf16.mxu0 %v954_v4  ;;  %v961_v11 = vld [vmem:[#allocation6 + $0xa8] sm:$0xff]   ;;  %v962_v12 = vld [vmem:[#allocation6 + $0x60] sm:$0xff]   ;;  %v966_v16 = vld [vmem:[#allocation6 + $0x58] sm:$0xff]  }
  0x1f   :  { %881 = vmatprep.subr.bf16.mxu1 %v955_v5  ;;  %v963_v13 = vld [vmem:[#allocation6 + $0xe0] sm:$0xff]   ;;  %v967_v17 = vld [vmem:[#allocation6 + $0xd8] sm:$0xff]   ;;  %v970_v20 = vld [vmem:[#allocation6 + $0x50] sm:$0xff]   ;;  %p1069_p13 = por %p1068_p12, %p1067_p11 }
  0x20   :  { %v964_v14 = vld [vmem:[#allocation6 + $0x20] sm:$0xff]   ;;  %v968_v18 = vld [vmem:[#allocation6 + $0x18] sm:$0xff]   ;;  %v971_v21 = vld [vmem:[#allocation6 + $0xd0] sm:$0xff]  }
  0x21   :  { %860 = vmatpush3.bf16.msra.mxu0 %v956_v6  ;;  %v965_v15 = vld [vmem:[#allocation6 + $0xa0] sm:$0xff]   ;;  %v969_v19 = vld [vmem:[#allocation6 + $0x98] sm:$0xff]   ;;  %v972_v22 = vld [vmem:[#allocation6 + $0x10] sm:$0xff]   ;;  %p1070_p0 = pnand %p1069_p13, %p1063_p10 }
  0x22   :  { %882 = vmatpush3.bf16.msra.mxu1 %v957_v7  ;;  %861 = vmatprep.subr.bf16.mxu0 %v958_v8  ;;  %v973_v23 = vld [vmem:[#allocation6 + $0x90] sm:$0xff]   ;;  %v974_v24 = vld [vmem:[#allocation6 + $0x48] sm:$0xff]   ;;  %v978_v28 = vld [vmem:[#allocation6 + $0x40] sm:$0xff]  }
  0x23   :  { %883 = vmatprep.subr.bf16.mxu1 %v959_v9  ;;  %v975_v25 = vld [vmem:[#allocation6 + $0xc8] sm:$0xff]   ;;  %v979_v29 = vld [vmem:[#allocation6 + $0xc0] sm:$0xff]   ;;  %v986_v38 = vld [vmem:[#allocation6 + $0x178] sm:$0xff]  }
  0x24   :  { %v976_v26 = vld [vmem:[#allocation6 + $0x8] sm:$0xff]   ;;  %v980_v30 = vld [vmem:[#allocation6] sm:$0xff]   ;;  %v987_v39 = vld [vmem:[#allocation6 + $0x1f8] sm:$0xff]  }
  0x25   :  { %862 = vmatpush3.bf16.msra.mxu0 %v960_v10  ;;  %v977_v27 = vld [vmem:[#allocation6 + $0x88] sm:$0xff]   ;;  %v981_v31 = vld [vmem:[#allocation6 + $0x80] sm:$0xff]   ;;  %v988_v40 = vld [vmem:[#allocation6 + $0x138] sm:$0xff]  }
  0x26   :  { %884 = vmatpush3.bf16.msra.mxu1 %v961_v11  ;;  %863 = vmatprep.subr.bf16.mxu0 %v962_v12  ;;  %v48_v32 = vld [vmem:[#allocation3] sm:$0xff]  ;;  %v49_v33 = vld [vmem:[#allocation3 + $0x8] sm:$0xff]  ;;  %v989_v41 = vld [vmem:[#allocation6 + $0x1b8] sm:$0xff]  }
  0x27   :  { %885 = vmatprep.subr.bf16.mxu1 %v963_v13  ;;  %v784_v34 = vcombine.low %v48_v32, %v48_v32  ;;  %v785_v35 = vcombine.high %v48_v32, %v48_v32  ;;  %v786_v36 = vcombine.low %v49_v33, %v49_v33  ;;  %v787_v37 = vcombine.high %v49_v33, %v49_v33  ;;  %v990_v42 = vld [vmem:[#allocation6 + $0x170] sm:$0xff]   ;;  %v994_v46 = vld [vmem:[#allocation6 + $0x168] sm:$0xff]   ;;  %v998_v50 = vld [vmem:[#allocation6 + $0x160] sm:$0xff]  }
  0x28   :  { %v991_v43 = vld [vmem:[#allocation6 + $0x1f0] sm:$0xff]   ;;  %v995_v47 = vld [vmem:[#allocation6 + $0x1e8] sm:$0xff]   ;;  %v999_v51 = vld [vmem:[#allocation6 + $0x1e0] sm:$0xff]  }
  0x29   :  { %864 = vmatpush3.bf16.msra.mxu0 %v964_v14  ;;  %624 = vmatprep.mubr.bf16.mxu0 %v785_v35  ;;  %v992_v44 = vld [vmem:[#allocation6 + $0x130] sm:$0xff]   ;;  %v996_v48 = vld [vmem:[#allocation6 + $0x128] sm:$0xff]   ;;  %v1000_v52 = vld [vmem:[#allocation6 + $0x120] sm:$0xff]  }
  0x2a   :  { %886 = vmatpush3.bf16.msra.mxu1 %v965_v15  ;;  %865 = vmatprep.subr.bf16.mxu0 %v966_v16  ;;  %v993_v45 = vld [vmem:[#allocation6 + $0x1b0] sm:$0xff]   ;;  %v997_v49 = vld [vmem:[#allocation6 + $0x1a8] sm:$0xff]   ;;  %v1001_v53 = vld [vmem:[#allocation6 + $0x1a0] sm:$0xff]  }
  0x2b   :  { %887 = vmatprep.subr.bf16.mxu1 %v967_v17  ;;  %664 = vmatprep.mubr.bf16.mxu1 %v787_v37  ;;  %v1002_v54 = vld [vmem:[#allocation6 + $0x158] sm:$0xff]   ;;  %v1006_v58 = vld [vmem:[#allocation6 + $0x150] sm:$0xff]   ;;  %v1010_v62 = vld [vmem:[#allocation6 + $0x148] sm:$0xff]  }
  0x2c   :  { %v1003_v55 = vld [vmem:[#allocation6 + $0x1d8] sm:$0xff]   ;;  %v1007_v59 = vld [vmem:[#allocation6 + $0x1d0] sm:$0xff]   ;;  %v1011_v63 = vld [vmem:[#allocation6 + $0x1c8] sm:$0xff]  }
  0x2d   :  { %866 = vmatpush3.bf16.msra.mxu0 %v968_v18  ;;  %v1004_v56 = vld [vmem:[#allocation6 + $0x118] sm:$0xff]   ;;  %v1008_v60 = vld [vmem:[#allocation6 + $0x110] sm:$0xff]   ;;  %v1012_v0 = vld [vmem:[#allocation6 + $0x108] sm:$0xff]  }
  0x2e   :  { %888 = vmatpush3.bf16.msra.mxu1 %v969_v19  ;;  %867 = vmatprep.subr.bf16.mxu0 %v970_v20  ;;  %v1005_v57 = vld [vmem:[#allocation6 + $0x198] sm:$0xff]   ;;  %v1009_v61 = vld [vmem:[#allocation6 + $0x190] sm:$0xff]   ;;  %v1013_v1 = vld [vmem:[#allocation6 + $0x188] sm:$0xff]  }
  0x2f   :  { %889 = vmatprep.subr.bf16.mxu1 %v971_v21  ;;  %v1014_v2 = vld [vmem:[#allocation6 + $0x140] sm:$0xff]   ;;  %v50_v6 = vld [vmem:[#allocation3 + $0x10] sm:$0xff]  ;;  %v51_v9 = vld [vmem:[#allocation3 + $0x18] sm:$0xff] }
  0x30   :  { %v1015_v3 = vld [vmem:[#allocation6 + $0x1c0] sm:$0xff]   ;;  %v788_v7 = vcombine.low %v50_v6, %v50_v6  ;;  %v789_v8 = vcombine.high %v50_v6, %v50_v6  ;;  %v790_v10 = vcombine.low %v51_v9, %v51_v9  ;;  %v791_v11 = vcombine.high %v51_v9, %v51_v9 }
  0x31   :  { %868 = vmatpush3.bf16.msra.mxu0 %v972_v22  ;;  %v1016_v4 = vld [vmem:[#allocation6 + $0x100] sm:$0xff]  }
  0x32   :  { %890 = vmatpush3.bf16.msra.mxu1 %v973_v23  ;;  %869 = vmatprep.subr.bf16.mxu0 %v974_v24  ;;  %v1017_v5 = vld [vmem:[#allocation6 + $0x180] sm:$0xff]  }
  0x33   :  { %891 = vmatprep.subr.bf16.mxu1 %v975_v25 }
  0x35   :  { %870 = vmatpush3.bf16.msra.mxu0 %v976_v26 }
  0x36   :  { %892 = vmatpush3.bf16.msra.mxu1 %v977_v27  ;;  %871 = vmatprep.subr.bf16.mxu0 %v978_v28 }
  0x37   :  { %893 = vmatprep.subr.bf16.mxu1 %v979_v29 }
  0x39   :  { %872 = vmatpush3.bf16.msra.mxu0 %v980_v30 }
  0x3a   :  { %894 = vmatpush3.bf16.msra.mxu1 %v981_v31  ;;  %901 = vmatprep.subr.bf16.mxu0 %v986_v38 }
  0x3b   :  { %923 = vmatprep.subr.bf16.mxu1 %v987_v39 }
  0x3c   :  { %625 = vmatmul.mubr.bf16.vlgmr.msra.gmra.mxu0 %v784_v34  ;;  %v856_v34 = vld [vmem:[%s1127_s2] ss:$0 sm:$0xff] }
  0x3d   :  { %665 = vmatmul.mubr.bf16.vlgmr.msra.gmra.mxu1 %v786_v36  ;;  %902 = vmatpush3.bf16.msra.mxu0 %v988_v40 }
  0x3e   :  { %924 = vmatpush3.bf16.msra.mxu1 %v989_v41  ;;  %903 = vmatprep.subr.bf16.mxu0 %v990_v42 }
  0x3f   :  { %925 = vmatprep.subr.bf16.mxu1 %v991_v43  ;;  %704 = vmatprep.mubr.bf16.mxu0 %v789_v8 }
  0x40   :  { %744 = vmatprep.mubr.bf16.mxu1 %v791_v11 }
  0x41   :  { %904 = vmatpush3.bf16.msra.mxu0 %v992_v44 }
  0x42   :  { %926 = vmatpush3.bf16.msra.mxu1 %v993_v45  ;;  %905 = vmatprep.subr.bf16.mxu0 %v994_v46 }
  0x43   :  { %927 = vmatprep.subr.bf16.mxu1 %v995_v47 }
  0x45   :  { %906 = vmatpush3.bf16.msra.mxu0 %v996_v48 }
  0x46   :  { %928 = vmatpush3.bf16.msra.mxu1 %v997_v49  ;;  %907 = vmatprep.subr.bf16.mxu0 %v998_v50 }
  0x47   :  { %929 = vmatprep.subr.bf16.mxu1 %v999_v51 }
  0x49   :  { %908 = vmatpush3.bf16.msra.mxu0 %v1000_v52 }
  0x4a   :  { %930 = vmatpush3.bf16.msra.mxu1 %v1001_v53  ;;  %909 = vmatprep.subr.bf16.mxu0 %v1002_v54 }
  0x4b   :  { %931 = vmatprep.subr.bf16.mxu1 %v1003_v55 }
  0x4d   :  { %910 = vmatpush3.bf16.msra.mxu0 %v1004_v56 }
  0x4e   :  { %932 = vmatpush3.bf16.msra.mxu1 %v1005_v57  ;;  %911 = vmatprep.subr.bf16.mxu0 %v1006_v58 }
  0x4f   :  { %933 = vmatprep.subr.bf16.mxu1 %v1007_v59 }
  0x51   :  { %912 = vmatpush3.bf16.msra.mxu0 %v1008_v60 }
  0x52   :  { %934 = vmatpush3.bf16.msra.mxu1 %v1009_v61  ;;  %913 = vmatprep.subr.bf16.mxu0 %v1010_v62 }
  0x53   :  { %935 = vmatprep.subr.bf16.mxu1 %v1011_v63 }
  0x55   :  { %914 = vmatpush3.bf16.msra.mxu0 %v1012_v0 }
  0x56   :  { %936 = vmatpush3.bf16.msra.mxu1 %v1013_v1  ;;  %915 = vmatprep.subr.bf16.mxu0 %v1014_v2 }
  0x57   :  { %937 = vmatprep.subr.bf16.mxu1 %v1015_v3 }
  0x59   :  { %916 = vmatpush3.bf16.msra.mxu0 %v1016_v4 }
  0x5a   :  { %938 = vmatpush3.bf16.msra.mxu1 %v1017_v5 }
  0x5c   :  { %705 = vmatmul.mubr.bf16.vlgmr.msra.gmra.mxu0 %v788_v7 }
  0x5d   :  { %745 = vmatmul.mubr.bf16.vlgmr.msra.gmra.mxu1 %v790_v10 }
  0xfc   :  { %v873_v12 = vpop.f32.mrf.mxu0 }
  0xfd   :  { %v895_v13 = vpop.f32.mrf.mxu1 }
  0xfe   :  { %v874_v14 = vpop.f32.mrf.mxu0 }
  0xff   :  { %v896_v15 = vpop.f32.mrf.mxu1  ;;  %v875_v20 = vadd.f32 %v874_v14, %v873_v12 }
 0x100   :  { %v876_v16 = vpop.f32.mrf.mxu0  ;;  %v897_v21 = vadd.f32 %v896_v15, %v895_v13 }
 0x101   :  { %v898_v17 = vpop.f32.mrf.mxu1 }
 0x102   :  { %v877_v18 = vpop.f32.mrf.mxu0  ;;  %v667_v26 = vadd.f32 %v897_v21, %v875_v20 }
 0x103   :  { %v899_v19 = vpop.f32.mrf.mxu1 }
 0x11c   :  { %v917_v22 = vpop.f32.mrf.mxu0 }
 0x11d   :  { %v939_v23 = vpop.f32.mrf.mxu1 }
 0x11e   :  { %v918_v24 = vpop.f32.mrf.mxu0 }
 0x11f   :  { %v940_v25 = vpop.f32.mrf.mxu1  ;;  %v919_v27 = vadd.f32 %v918_v24, %v917_v22 }
 0x120   :  { %v920_v28 = vpop.f32.mrf.mxu0  ;;  %v941_v31 = vadd.f32 %v940_v25, %v939_v23 }
 0x121   :  { %v942_v29 = vpop.f32.mrf.mxu1  ;;  %v707_v30 = vadd.f32 %v919_v27, %v667_v26 }
 0x122   :  { %v921_v32 = vpop.f32.mrf.mxu0 }
 0x123   :  { %v943_v33 = vpop.f32.mrf.mxu1  ;;  %v747_v35 = vadd.f32 %v941_v31, %v707_v30 }
 0x125   :  { %v765_v36 = vadd.f32 %v856_v34, %v747_v35 }
 0x127   :  { %v766_v37 = vpack.c.bf16 %v765_v36, %v765_v36 }
 0x129   :  { %767 = vst [vmem:[#allocation8] sm:$0xf] %v766_v37 }
 0x12a   :  { %1073 = shalt.err (!%p1070_p0)
}
 0x12b   :  { %777 = dma.vmem_to_hbm [thread:$0]  %s775_s25, 64, %s1128_s3, [#allocation5]  }
 0x12c   :  { %1086 = dma.done.wait [#allocation5], 64  }
 0x12d   :  { %1087 = vsyncadd [#allocation5], 4294967232 }
 0x12e   :  { %781 = vsyncpa [#allocation4], 1 }
 0x12f   :  { %782 = vsyncpa [#allocation7], 1 }
 0x130   :  { %783 = vsyncpa [#allocation5], 1 }

</bundles_post_ra>
